<compile_context>
chip_gen: v5e
topology: v5e:2x2
jax: 0.10.0
libtpu: 0.0.40
codegen_flags: <defaults>
</compile_context>

<pallas_src>
import jax
import jax.numpy as jnp
from jax.experimental import pallas as pl
from jax.experimental.pallas import tpu as pltpu


def _round_up(x, mult):
    return (x + mult - 1) // mult * mult


def edsim_kernel(qp_ref, qn_ref, kpt_ref, kn_ref, o_ref):
    # qp_ref : (tn, dk_pad)     projected q tile (operand dtype)
    # qn_ref : (tn, 1)          ||qp_i||^2                  (f32)
    # kpt_ref: (dk_pad, tm)     -2 * projected k, transposed (operand dtype)
    # kn_ref : (1, tm)          ||kp_j||^2                  (f32)
    # o_ref  : (tn, tm)         score tile
    cross = jnp.dot(qp_ref[...], kpt_ref[...],
                    preferred_element_type=jnp.float32)        # MXU: qp @ (-2 kp^T)
    sq = qn_ref[...] + kn_ref[...] + cross                     # VPU broadcast adds
    sq = jnp.maximum(sq, 0.0)                                  # guard fp cancellation
    o_ref[...] = (-0.5 * jnp.sqrt(sq)).astype(o_ref.dtype)


def edsim_pallas(q, k, w, *, tn=512, tm=512,
                 operand_dtype=jnp.bfloat16, out_dtype=jnp.float32,
                 resident_kpt_bytes_max=4 << 20):
    """EDSim forward: score[i, j] = -||(q_i - k_j) @ W^T||_2 / 2.

    q: (n, d_in), k: (m, d_in), w: (d_k, d_in)  (nn.Linear(d_in, d_k).weight).
    operand_dtype: dtype of the Gram-matmul operands (bf16 halves HBM/VMEM
      traffic and hits the MXU's native rate; accumulation & epilogue stay f32).
    out_dtype: dtype of the (n, m) score output (bf16 halves the largest stream).
    resident_kpt_bytes_max: if the full projected-k operand fits in this many
      bytes it is kept resident in VMEM and the grid collapses to 1-D over q.
    """
    n, d_in = q.shape
    m, _ = k.shape
    d_k = w.shape[0]

    f32 = jnp.float32
    hi = jax.lax.Precision.HIGHEST
    op_dtype = jnp.dtype(operand_dtype)
    out_dtype = jnp.dtype(out_dtype)

    # ---- Hoisted, one-time XLA work (small matmuls + layout plumbing) ----
    qp = jnp.dot(q.astype(f32), w.T.astype(f32), precision=hi)       # (n, d_k)
    kpt = jnp.dot(w.astype(f32), k.T.astype(f32), precision=hi)      # (d_k, m)

    qp_c = qp.astype(op_dtype)                                       # rounded operands
    kpt_c = kpt.astype(op_dtype)
    # Norms from the SAME rounded operands as the Gram matmul (consistency).
    qn = jnp.sum(qp_c.astype(f32) ** 2, axis=-1, keepdims=True)      # (n, 1)  f32
    kn = jnp.sum(kpt_c.astype(f32) ** 2, axis=0, keepdims=True)      # (1, m)  f32
    kpt_s = (kpt_c.astype(f32) * -2.0).astype(op_dtype)              # exact *2 scale

    # ---- Tiling: sublane mult of 8, lane mult of 128; d_k padded to 8 only ----
    dk_pad = _round_up(d_k, 8)
    m_pad128 = _round_up(m, 128)
    op_bytes = op_dtype.itemsize
    out_bytes = out_dtype.itemsize

    resident = (dk_pad * m_pad128 * op_bytes + m_pad128 * 4) <= resident_kpt_bytes_max

    tn = _round_up(max(8, min(int(tn), _round_up(n, 8))), 8)
    if resident:
        tm = m_pad128                       # full k extent lives in VMEM
    else:
        tm = _round_up(max(128, min(int(tm), m_pad128)), 128)

    # Keep the double-buffered footprint conservative (fits v7x's 64 MiB VMEM).
    VMEM_BUDGET = 28 << 20

    def est(tn_, tm_):
        return 2 * (tn_ * dk_pad * op_bytes + tn_ * 4
                    + dk_pad * tm_ * op_bytes + tm_ * 4
                    + tn_ * tm_ * out_bytes)

    while est(tn, tm) > VMEM_BUDGET:
        if resident:
            if tn <= 8:
                break
            tn = _round_up(max(8, tn // 2), 8)
        else:
            if tn >= tm and tn > 8:
                tn = _round_up(max(8, tn // 2), 8)
            elif tm > 128:
                tm = max(128, (tm // 2) // 128 * 128)
            elif tn > 8:
                tn = _round_up(max(8, tn // 2), 8)
            else:
                break

    n_pad = _round_up(n, tn)
    m_pad = m_pad128 if resident else _round_up(m, tm)

    qp_p = jnp.pad(qp_c, ((0, n_pad - n), (0, dk_pad - d_k)))
    qn_p = jnp.pad(qn, ((0, n_pad - n), (0, 0)))
    kpt_p = jnp.pad(kpt_s, ((0, dk_pad - d_k), (0, m_pad - m)))
    kn_p = jnp.pad(kn, ((0, 0), (0, m_pad - m)))

    if resident:
        grid = (n_pad // tn,)
        in_specs = [
            pl.BlockSpec((tn, dk_pad),    lambda i: (i, 0)),   # qp tile
            pl.BlockSpec((tn, 1),         lambda i: (i, 0)),   # ||qp||^2 tile
            pl.BlockSpec((dk_pad, m_pad), lambda i: (0, 0)),   # resident -2*kp^T
            pl.BlockSpec((1, m_pad),      lambda i: (0, 0)),   # resident ||kp||^2
        ]
        out_specs = pl.BlockSpec((tn, m_pad), lambda i: (i, 0))
        dims = ("parallel",)
    else:
        grid = (n_pad // tn, m_pad // tm)
        in_specs = [
            pl.BlockSpec((tn, dk_pad), lambda i, j: (i, 0)),
            pl.BlockSpec((tn, 1),      lambda i, j: (i, 0)),
            pl.BlockSpec((dk_pad, tm), lambda i, j: (0, j)),
            pl.BlockSpec((1, tm),      lambda i, j: (0, j)),
        ]
        out_specs = pl.BlockSpec((tn, tm), lambda i, j: (i, j))
        dims = ("parallel", "parallel")

    vmem_limit = int(min(48 << 20, max(32 << 20, int(est(tn, tm) * 1.5))))

    gi = n_pad // tn
    kpt_passes = 1 if resident else gi   # kpt/kn are re-fetched once per q tile in 2-D grid
    bytes_accessed = (n_pad * dk_pad * op_bytes + n_pad * 4
                      + kpt_passes * (dk_pad * m_pad * op_bytes + m_pad * 4)
                      + n_pad * m_pad * out_bytes)

    out = pl.pallas_call(
        edsim_kernel,
        out_shape=jax.ShapeDtypeStruct((n_pad, m_pad), out_dtype),
        grid_spec=pltpu.PrefetchScalarGridSpec(
            num_scalar_prefetch=0,
            grid=grid,
            in_specs=in_specs,
            out_specs=out_specs,
        ),
        compiler_params=pltpu.CompilerParams(
            dimension_semantics=dims,
            vmem_limit_bytes=vmem_limit),
        cost_estimate=pl.CostEstimate(
            flops=2 * n_pad * m_pad * dk_pad + 3 * n_pad * m_pad,
            transcendentals=n_pad * m_pad,
            bytes_accessed=int(bytes_accessed)),
    )(qp_p, qn_p, kpt_p, kn_p)

    return out[:n, :m]


def edsim_ref(q, k, w):
    # Pure-JAX reference mirroring the PyTorch forward literally.
    n, d = q.shape
    m = k.shape[0]
    qe = jnp.broadcast_to(q[:, None, :], (n, m, d))
    ke = jnp.broadcast_to(k[None, :, :], (n, m, d))
    diff = qe - ke
    proj = jnp.einsum('nmd,kd->nmk', diff, w, precision=jax.lax.Precision.HIGHEST)
    dist = jnp.sqrt(jnp.sum(proj * proj, axis=-1))
    return -dist / 2.0


def glorot_uniform(key, shape):
    # Xavier/glorot uniform: U(-a, a), a = sqrt(6 / (fan_in + fan_out))
    fan_out, fan_in = shape
    a = (6.0 / (fan_in + fan_out)) ** 0.5
    return jax.random.uniform(key, shape, minval=-a, maxval=a, dtype=jnp.float32)


if __name__ == "__main__":
    key = jax.random.PRNGKey(0)
    kq, kk, kw, kq2, kk2, kw2 = jax.random.split(key, 6)

    # Small shapes consistent with the module: q (n, d_in), k (m, d_in), W (d_k, d_in)
    n, m, d_in, d_k = 16, 16, 32, 32
    q = jax.random.normal(kq, (n, d_in), dtype=jnp.float32)
    k = jax.random.normal(kk, (m, d_in), dtype=jnp.float32)
    w = glorot_uniform(kw, (d_k, d_in))   # nn.Linear(d_in, d_k).weight shape
    ref = edsim_ref(q, k, w)

    # 1) f32 operands, resident-kpt 1-D grid path (tight tolerance).
    out = jax.block_until_ready(edsim_pallas(q, k, w, operand_dtype=jnp.float32))
    assert out.shape == (n, m)
    assert jnp.allclose(out, ref, atol=1e-4, rtol=1e-4), \
        f"f32 max abs err {jnp.max(jnp.abs(out - ref))}"

    # 2) default bf16 Gram-matmul operands (halved HBM traffic) — looser tolerance.
    out_bf = jax.block_until_ready(edsim_pallas(q, k, w))
    assert jnp.allclose(out_bf, ref, atol=5e-2, rtol=5e-2), \
        f"bf16 max abs err {jnp.max(jnp.abs(out_bf - ref))}"

    # 3) ragged shapes, forced 2-D tiled grid (exercises padding / multi-tile / slicing).
    n2, m2, d_in2, d_k2 = 200, 300, 48, 24
    q2 = jax.random.normal(kq2, (n2, d_in2), dtype=jnp.float32)
    k2 = jax.random.normal(kk2, (m2, d_in2), dtype=jnp.float32)
    w2 = glorot_uniform(kw2, (d_k2, d_in2))
    out2 = jax.block_until_ready(
        edsim_pallas(q2, k2, w2, tn=64, tm=128, operand_dtype=jnp.float32,
                     resident_kpt_bytes_max=0))
    ref2 = edsim_ref(q2, k2, w2)
    assert out2.shape == (n2, m2)
    assert jnp.allclose(out2, ref2, atol=1e-3, rtol=1e-3), \
        f"2-D grid max abs err {jnp.max(jnp.abs(out2 - ref2))}"

    # TODO(synk): method='softmax'/'sigmoid'/'exp' post-processing and the
    # flatten=True scatter_softmax path are not implemented (default is 'origin').
    print("KERNEL_OK")
</pallas_src>

<mosaic_0001>
module attributes {stable_mosaic.version = 11 : i64} {
  func.func @edsim_kernel(%arg0: i32, %arg1: memref<16x32xf32, #tpu.memory_space<vmem>>, %arg2: memref<16x1xf32, #tpu.memory_space<vmem>>, %arg3: memref<32x128xf32, #tpu.memory_space<vmem>>, %arg4: memref<1x128xf32, #tpu.memory_space<vmem>>, %arg5: memref<16x128xf32, #tpu.memory_space<vmem>>) attributes {dimension_semantics = [#tpu.dimension_semantics<parallel>], iteration_bounds = array<i64: 1>, scalar_prefetch = 0 : i64, scratch_operands = 0 : i64, tpu.core_type = #tpu.core_type<tc>, window_params = [{transform_indices = @transform_0, window_bounds = array<i64: 16, 32>}, {transform_indices = @transform_1, window_bounds = array<i64: 16, 1>}, {pipeline_mode = #tpu.pipeline_mode<synchronous>, transform_indices = @transform_2, window_bounds = array<i64: 32, 128>}, {pipeline_mode = #tpu.pipeline_mode<synchronous>, transform_indices = @transform_3, window_bounds = array<i64: 1, 128>}, {transform_indices = @transform_4, window_bounds = array<i64: 16, 128>}]} {
    %c0 = arith.constant 0 : index
    %c0_0 = arith.constant 0 : index
    %0 = vector.load %arg1[%c0, %c0_0] : memref<16x32xf32, #tpu.memory_space<vmem>>, vector<16x32xf32>
    %c0_1 = arith.constant 0 : index
    %c0_2 = arith.constant 0 : index
    %1 = vector.load %arg3[%c0_1, %c0_2] : memref<32x128xf32, #tpu.memory_space<vmem>>, vector<32x128xf32>
    %cst = arith.constant dense<0.000000e+00> : vector<16x128xf32>
    %2 = tpu.matmul %0, %1, %cst {dimension_numbers = #tpu.dot_dimension_numbers<[1], [0], [0], [1], [0, 0, 1, 1], [], []>} : vector<16x32xf32>, vector<32x128xf32>, vector<16x128xf32> -> vector<16x128xf32>
    %c0_3 = arith.constant 0 : index
    %c0_4 = arith.constant 0 : index
    %3 = vector.load %arg2[%c0_3, %c0_4] : memref<16x1xf32, #tpu.memory_space<vmem>>, vector<16x1xf32>
    %c0_5 = arith.constant 0 : index
    %c0_6 = arith.constant 0 : index
    %4 = vector.load %arg4[%c0_5, %c0_6] : memref<1x128xf32, #tpu.memory_space<vmem>>, vector<1x128xf32>
    %5 = vector.broadcast %3 : vector<16x1xf32> to vector<16x128xf32>
    %6 = vector.broadcast %4 : vector<1x128xf32> to vector<16x128xf32>
    %7 = arith.addf %5, %6 : vector<16x128xf32>
    %8 = arith.addf %7, %2 : vector<16x128xf32>
    %cst_7 = arith.constant 0.000000e+00 : f32
    %9 = vector.broadcast %cst_7 : f32 to vector<16x128xf32>
    %10 = arith.maximumf %8, %9 : vector<16x128xf32>
    %11 = math.sqrt %10 : vector<16x128xf32>
    %cst_8 = arith.constant -5.000000e-01 : f32
    %12 = vector.broadcast %cst_8 : f32 to vector<16x128xf32>
    %13 = arith.mulf %12, %11 : vector<16x128xf32>
    %c0_9 = arith.constant 0 : index
    %c0_10 = arith.constant 0 : index
    %14 = vector.load %arg5[%c0_9, %c0_10] : memref<16x128xf32, #tpu.memory_space<vmem>>, vector<16x128xf32>
    tpu.vector_store %arg5[%c0_9, %c0_10], %13 {strides = array<i32>} : memref<16x128xf32, #tpu.memory_space<vmem>>, vector<16x128xf32>,
    return
  }
  func.func @transform_0(%arg0: i32) -> (i32, i32) {
    %c0_i32 = arith.constant 0 : i32
    %c0_i32_0 = arith.constant 0 : i32
    return %arg0, %c0_i32 : i32, i32
  }
  func.func @transform_1(%arg0: i32) -> (i32, i32) {
    %c0_i32 = arith.constant 0 : i32
    %c0_i32_0 = arith.constant 0 : i32
    return %arg0, %c0_i32 : i32, i32
  }
  func.func @transform_2(%arg0: i32) -> (i32, i32) {
    %c0_i32 = arith.constant 0 : i32
    %c0_i32_0 = arith.constant 0 : i32
    %c0_i32_1 = arith.constant 0 : i32
    return %c0_i32, %c0_i32_0 : i32, i32
  }
  func.func @transform_3(%arg0: i32) -> (i32, i32) {
    %c0_i32 = arith.constant 0 : i32
    %c0_i32_0 = arith.constant 0 : i32
    %c0_i32_1 = arith.constant 0 : i32
    return %c0_i32, %c0_i32_0 : i32, i32
  }
  func.func @transform_4(%arg0: i32) -> (i32, i32) {
    %c0_i32 = arith.constant 0 : i32
    %c0_i32_0 = arith.constant 0 : i32
    return %arg0, %c0_i32 : i32, i32
  }
}

</mosaic_0001>

<bundles_post_ra>
// kernel: tpu_custom_call.1
= control target key start
LH: loop header
LB: loop body
LE: loop exit
PB: predicated region body
PF: predicated region fallthrough
CT: control target
= control target key end

     0   :  { %9 = vsyncpa [#allocation3], 0  ;;  %s265_s0 = inlined_call_operand.vmem [shape: f32[16,32], index: 0, kind: input, shape index: {}]   ;;  %s266_s1 = inlined_call_operand.vmem [shape: f32[16,1], index: 1, kind: input, shape index: {}]   ;;  %s267_s2 = inlined_call_operand.hbm [shape: f32[32,128], index: 2, kind: input, shape index: {}]   ;;  %s268_s3 = inlined_call_operand.vmem [shape: f32[1,128], index: 3, kind: input, shape index: {}]   ;;  %s269_s4 = inlined_call_operand.hbm [shape: f32[16,128], index: 4, kind: output, shape index: {}]  }
   0x1   :  { %10 = vsyncpa [#allocation4], 0  ;;  %s19_s17 = sshll.u32 %s267_s2, 4  ;;  %s208_s18 = smov [#allocation2]   ;;  %s20_s17 = int_to_ptr.hbm [resolvable:$true] %s19_s17 }
   0x2   :  { %s21_s19 = sshll.u32 %s208_s18, 4  ;;  %s209_s20 = smov 128   ;;  %s22_s19 = int_to_ptr.vmem [resolvable:$true] %s21_s19 }
   0x3   :  { %s210_s21 = smov 8  }
   0x4   :  { %27 = dma.hbm_to_vmem [thread:$0]  %s20_s17, 512, %s22_s19, [#allocation3], %s209_s20, %s209_s20, %s210_s21  }
   0x5   :  { %204 = dma.done.wait [#allocation3], 512  }
   0x6   :  { %205 = vsyncadd [#allocation3], 4294966784  ;;  %v211_v0 = vmov 0   ;;  %v70_v1 = vld [vmem:[%s266_s1] sm:$0xff]  ;;  %v39_v2 = vld [vmem:[#allocation2 + $0x18] sm:$0xff]  ;;  %vm40_vm0 = vcmask 261120  }
   0x7   :  { %150 = vset.pattern.permute.xlu0 %v211_v0  ;;  %v38_v3 = vld [vmem:[#allocation2 + $0x10] sm:$0xff]  ;;  %59 = vmatpush.msra.mxu0 %v39_v2  ;;  %v37_v4 = vld [vmem:[#allocation2 + $0x8] sm:$0xff]  ;;  %v36_v5 = vld [vmem:[#allocation2] sm:$0xff]  ;;  %s126_s6 = sshll.u32 %s269_s4, 4  ;;  %s127_s6 = int_to_ptr.hbm [resolvable:$true] %s126_s6 }
   0x8   :  { %75 = vperm.xlu0 %150, %v70_v1   ;;  %141 = vmatpush.msra.mxu1 %v39_v2  ;;  %v34_v6 = vld [vmem:[%s265_s0] sm:$0xff]  ;;  %v35_v7 = vld [vmem:[%s265_s0 + $0x8] sm:$0xff]  ;;  %s212_s0 = smov [#allocation5]  }
   0x9   :  { %60 = vmatpush.msra.mxu0 %v38_v3  ;;  %v71_v8 = vld [vmem:[%s266_s1 + $0x8] sm:$0xff]  ;;  %v151_v10 = vld [vmem:[%s268_s3] ss:$0 sm:$0xff]  ;;  %s124_s1 = sshll.u32 %s212_s0, 4  ;;  %s125_s1 = int_to_ptr.vmem [resolvable:$true] %s124_s1 }
   0xa   :  { %142 = vmatpush.msra.mxu1 %v38_v3 }
   0xb   :  { %61 = vmatpush.msra.mxu0 %v37_v4 }
   0xc   :  { %143 = vmatpush.msra.mxu1 %v37_v4 }
   0xd   :  { %62 = vmatpush.msra.mxu0 %v36_v5 }
   0xe   :  { %144 = vmatpush.msra.mxu1 %v36_v5  ;;  %139 = vmatmul.msk.f32.vlgmr.msra.gmra.mxu0 %vm40_vm0, %v34_v6 }
   0xf   :  { %140 = vmatmul.msk.f32.vlgmr.msra.gmra.mxu1 %vm40_vm0, %v35_v7 }
  0x10   :  { %80 = vperm.xlu0 %150, %v71_v8  }
  0x7a   :  { %v76_v9 = vpop.permute.xlu0 %75 }
  0x7b   :  { %v86_v12 = vadd.f32 %v151_v10, %v76_v9 }
  0x82   :  { %v81_v11 = vpop.permute.xlu0 %80 }
  0x83   :  { %v87_v13 = vadd.f32 %v151_v10, %v81_v11 }
  0x8b   :  { %v64_v14 = vpop.f32.mrf.mxu0 }
  0x8c   :  { %v88_v15 = vadd.f32 %v86_v12, %v64_v14  ;;  %v67_v16 = vpop.f32.mrf.mxu1 }
  0x8d   :  { %v89_v17 = vadd.f32 %v87_v13, %v67_v16 }
  0x8e   :  { %v90_v18 = vmax.f32 %v88_v15, 0.0 }
  0x8f   :  { %v91_v19 = vmax.f32 %v89_v17, 0.0 }
  0x90   :  { %152 = vrsqrt.f32 %v90_v18  ;;  %vm99_vm1 = vcmp.eq.f32.partialorder %v90_v18, inf  ;;  %v102_v33 = vand.u32 2147483648, %v90_v18  ;;  %vm101_vm2 = vcmp.eq.f32.partialorder %v90_v18, 0.0 }
  0x91   :  { %154 = vrsqrt.f32 %v91_v19  ;;  %vm111_vm3 = vcmp.eq.f32.partialorder %v91_v19, inf  ;;  %v114_v36 = vand.u32 2147483648, %v91_v19  ;;  %vm113_vm4 = vcmp.eq.f32.partialorder %v91_v19, 0.0 }
  0x96   :  { %v153_v20 = vpop.eup %152 }
  0x97   :  { %v155_v21 = vpop.eup %154  ;;  %v93_v22 = vmul.f32 %v153_v20, %v90_v18 }
  0x98   :  { %v105_v23 = vmul.f32 %v155_v21, %v91_v19 }
  0x99   :  { %v94_v24 = vmul.f32 %v153_v20, %v93_v22 }
  0x9a   :  { %v106_v25 = vmul.f32 %v155_v21, %v105_v23 }
  0x9b   :  { %v95_v26 = vmul.f32 0.5, %v94_v24 }
  0x9c   :  { %v107_v27 = vmul.f32 0.5, %v106_v25 }
  0x9d   :  { %v96_v28 = vsub.f32 1.5, %v95_v26 }
  0x9e   :  { %v108_v29 = vsub.f32 1.5, %v107_v27 }
  0x9f   :  { %v97_v30 = vmul.f32 %v153_v20, %v96_v28 }
  0xa0   :  { %v109_v31 = vmul.f32 %v155_v21, %v108_v29 }
  0xa1   :  { %v98_v32 = vmul.f32 %v97_v30, %v90_v18 }
  0xa2   :  { %v110_v34 = vmul.f32 %v109_v31, %v91_v19 }
  0xa3   :  { %v100_v35 = vsel %vm99_vm1, %v90_v18, %v98_v32 }
  0xa4   :  { %v103_v37 = vsel %vm101_vm2, %v102_v33, %v100_v35  ;;  %v112_v38 = vsel %vm111_vm3, %v91_v19, %v110_v34 }
  0xa5   :  { %v115_v39 = vsel %vm113_vm4, %v114_v36, %v112_v38  ;;  %v116_v40 = vmul.f32 -0.5, %v103_v37 }
  0xa6   :  { %v117_v41 = vmul.f32 -0.5, %v115_v39 }
  0xa7   :  { %118 = vst [vmem:[#allocation5] sm:$0xff] %v116_v40 }
  0xa8   :  { %119 = vst [vmem:[#allocation5 + $0x8] sm:$0xff] %v117_v41 }
  0xa9   :  { %132 = dma.vmem_to_hbm [thread:$0]  %s125_s1, 256, %s127_s6, [#allocation4], %s209_s20, %s209_s20, %s210_s21  }
  0xaa   :  { %206 = dma.done.wait [#allocation4], 256  }
  0xab   :  { %207 = vsyncadd [#allocation4], 4294967040 }
  0xac   :  { %137 = vsyncpa [#allocation3], 1 }
  0xad   :  { %138 = vsyncpa [#allocation4], 1 }

</bundles_post_ra>
